<compile_context>
chip_gen: v7x
topology: tpu7x:2x2x1
jax: 0.10.0
libtpu: 0.0.40
codegen_flags: <defaults>
</compile_context>

<pallas_src>
import jax
import jax.numpy as jnp
from jax.experimental import pallas as pl
from jax.experimental.pallas import tpu as pltpu

IN_DIM = 28 * 28   # 784
H_DIM = 200
OUT_DIM = 10

# Lane-aligned padded dims (hidden / output only; input stays 784).
H_PAD = 256
OUT_PAD = 128


def _round_up(x, m):
    return ((x + m - 1) // m) * m


def mlp_kernel(x_ref, w1_ref, b1_ref, w2_ref, b2_ref, w3_ref, b3_ref, out_ref):
    # x arrives unpadded (TB, 784) f32; cast to bf16 for the MXU.
    x = x_ref[...].astype(jnp.bfloat16)

    # fc1 + ReLU  (bf16 MXU operands, f32 accumulation, f32 elementwise)
    h1 = jnp.dot(x, w1_ref[...], preferred_element_type=jnp.float32) + b1_ref[...]
    h1 = jnp.maximum(h1, 0.0)

    # fc2 + ReLU
    h2 = jnp.dot(h1.astype(jnp.bfloat16), w2_ref[...],
                 preferred_element_type=jnp.float32) + b2_ref[...]
    h2 = jnp.maximum(h2, 0.0)

    # fc3
    logits = jnp.dot(h2.astype(jnp.bfloat16), w3_ref[...],
                     preferred_element_type=jnp.float32) + b3_ref[...]

    # Mask padded output lanes (cols >= OUT_DIM) so they do not affect the
    # softmax statistics; they are sliced off in the wrapper.
    col = jax.lax.broadcasted_iota(jnp.int32, logits.shape, 1)
    logits = jnp.where(col < OUT_DIM, logits, -1e30)

    # log_softmax over the last axis (PyTorch dim=1), f32 throughout.
    m = jnp.max(logits, axis=-1, keepdims=True)
    shifted = logits - m
    lse = jnp.log(jnp.sum(jnp.exp(shifted), axis=-1, keepdims=True))
    out_ref[...] = shifted - lse


def prepare_params(w1, b1, w2, b2, w3, b3):
    """One-time pad + cast of weights/biases (hoisted out of the forward).

    Weights are stored pre-transposed as (in, out) for the x @ W convention;
    zero padding contributes exactly 0 to the real lanes.
    """
    w1p = jnp.zeros((IN_DIM, H_PAD), jnp.bfloat16).at[:, :H_DIM].set(
        w1.astype(jnp.bfloat16))
    b1p = jnp.zeros((1, H_PAD), jnp.float32).at[:, :H_DIM].set(b1)
    w2p = jnp.zeros((H_PAD, H_PAD), jnp.bfloat16).at[:H_DIM, :H_DIM].set(
        w2.astype(jnp.bfloat16))
    b2p = jnp.zeros((1, H_PAD), jnp.float32).at[:, :H_DIM].set(b2)
    w3p = jnp.zeros((H_PAD, OUT_PAD), jnp.bfloat16).at[:H_DIM, :OUT_DIM].set(
        w3.astype(jnp.bfloat16))
    b3p = jnp.zeros((1, OUT_PAD), jnp.float32).at[:, :OUT_DIM].set(b3)
    return w1p, b1p, w2p, b2p, w3p, b3p


@jax.jit
def fully_connected_forward(x, w1p, b1p, w2p, b2p, w3p, b3p):
    """x: (B, 784) f32, unpadded.  Params from `prepare_params`."""
    B = x.shape[0]

    # Batch tile: >=2 grid steps once B > 8 (so v7x's second TensorCore gets
    # work via the "parallel" axis), capped at 512 rows (near HBM roofline on
    # v5e/v6e, amortizes the ~0.35us/step pipeline overhead).  Multiple of 8
    # for sublane alignment; the last block may be ragged (OOB writes masked).
    TB = max(8, min(512, _round_up(pl.cdiv(B, 2), 8)))
    grid = (pl.cdiv(B, TB),)
    rows = grid[0] * TB  # rows actually processed (incl. ragged tail)

    def resident(shape):
        # Weights/biases: same block every grid step -> stay in VMEM.
        return pl.BlockSpec(shape, lambda i: (0, 0))

    flops = 2 * rows * (IN_DIM * H_PAD + H_PAD * H_PAD + H_PAD * OUT_PAD)
    transcendentals = rows * OUT_PAD + rows          # exp per lane + log per row
    bytes_accessed = (B * IN_DIM * 4                 # x f32 read (unpadded)
                      + (w1p.size + w2p.size + w3p.size) * 2
                      + (b1p.size + b2p.size + b3p.size) * 4
                      + B * OUT_PAD * 4)             # output write

    out_padded = pl.pallas_call(
        mlp_kernel,
        out_shape=jax.ShapeDtypeStruct((B, OUT_PAD), jnp.float32),
        grid_spec=pltpu.PrefetchScalarGridSpec(
            num_scalar_prefetch=0,
            grid=grid,
            in_specs=[
                pl.BlockSpec((TB, IN_DIM), lambda i: (i, 0)),   # x tiles (784 == full dim)
                resident((IN_DIM, H_PAD)),                      # w1
                resident((1, H_PAD)),                           # b1
                resident((H_PAD, H_PAD)),                       # w2
                resident((1, H_PAD)),                           # b2
                resident((H_PAD, OUT_PAD)),                     # w3
                resident((1, OUT_PAD)),                         # b3
            ],
            out_specs=pl.BlockSpec((TB, OUT_PAD), lambda i: (i, 0)),
        ),
        compiler_params=pltpu.CompilerParams(
            dimension_semantics=("parallel",),
            vmem_limit_bytes=32 << 20,
        ),
        cost_estimate=pl.CostEstimate(
            flops=flops,
            transcendentals=transcendentals,
            bytes_accessed=bytes_accessed,
        ),
    )(x, w1p, b1p, w2p, b2p, w3p, b3p)

    # Strip the padded logit lanes (batch was never padded).
    return out_padded[:, :OUT_DIM]


def init_params(key):
    # Deterministic synthetic init (nn.Linear-equivalent weights, stored
    # pre-transposed as (in, out) for the x @ W convention).
    k1, k2, k3, k4, k5, k6 = jax.random.split(key, 6)
    w1 = jax.random.normal(k1, (IN_DIM, H_DIM), jnp.float32) * (1.0 / jnp.sqrt(IN_DIM))
    b1 = jax.random.normal(k2, (1, H_DIM), jnp.float32) * 0.01
    w2 = jax.random.normal(k3, (H_DIM, H_DIM), jnp.float32) * (1.0 / jnp.sqrt(H_DIM))
    b2 = jax.random.normal(k4, (1, H_DIM), jnp.float32) * 0.01
    w3 = jax.random.normal(k5, (H_DIM, OUT_DIM), jnp.float32) * (1.0 / jnp.sqrt(H_DIM))
    b3 = jax.random.normal(k6, (1, OUT_DIM), jnp.float32) * 0.01
    return w1, b1, w2, b2, w3, b3


def reference_forward(x, w1, b1, w2, b2, w3, b3):
    h1 = jnp.maximum(x @ w1 + b1, 0.0)
    h2 = jnp.maximum(h1 @ w2 + b2, 0.0)
    logits = h2 @ w3 + b3
    return jax.nn.log_softmax(logits, axis=1)


if __name__ == "__main__":
    key = jax.random.PRNGKey(0)
    kx, kp = jax.random.split(key)

    B = 8  # small demo batch
    x = jax.random.normal(kx, (B, IN_DIM), jnp.float32)
    raw_params = init_params(kp)

    # One-time param preparation (pad + bf16 cast), outside the forward.
    packed = prepare_params(*raw_params)

    out = fully_connected_forward(x, *packed)
    out = jax.block_until_ready(out)

    ref = reference_forward(x, *raw_params)
    assert out.shape == (B, OUT_DIM)
    # bf16 matmul operands (f32 accumulation) -> compare with a looser tol.
    assert jnp.allclose(out, ref, atol=3e-2, rtol=3e-2), (
        float(jnp.max(jnp.abs(out - ref))))

    print("KERNEL_OK")
</pallas_src>

<mosaic_0001>
module attributes {stable_mosaic.version = 11 : i64} {
  func.func @mlp_kernel(%arg0: i32, %arg1: memref<8x784xf32, #tpu.memory_space<vmem>>, %arg2: memref<784x256xbf16, #tpu.memory_space<vmem>>, %arg3: memref<1x256xf32, #tpu.memory_space<vmem>>, %arg4: memref<256x256xbf16, #tpu.memory_space<vmem>>, %arg5: memref<1x256xf32, #tpu.memory_space<vmem>>, %arg6: memref<256x128xbf16, #tpu.memory_space<vmem>>, %arg7: memref<1x128xf32, #tpu.memory_space<vmem>>, %arg8: memref<8x128xf32, #tpu.memory_space<vmem>>) attributes {dimension_semantics = [#tpu.dimension_semantics<parallel>], iteration_bounds = array<i64: 1>, scalar_prefetch = 0 : i64, scratch_operands = 0 : i64, tpu.core_type = #tpu.core_type<tc>, window_params = [{transform_indices = @transform_0, window_bounds = array<i64: 8, 784>}, {pipeline_mode = #tpu.pipeline_mode<synchronous>, transform_indices = @transform_1, window_bounds = array<i64: 784, 256>}, {pipeline_mode = #tpu.pipeline_mode<synchronous>, transform_indices = @transform_2, window_bounds = array<i64: 1, 256>}, {pipeline_mode = #tpu.pipeline_mode<synchronous>, transform_indices = @transform_3, window_bounds = array<i64: 256, 256>}, {pipeline_mode = #tpu.pipeline_mode<synchronous>, transform_indices = @transform_4, window_bounds = array<i64: 1, 256>}, {pipeline_mode = #tpu.pipeline_mode<synchronous>, transform_indices = @transform_5, window_bounds = array<i64: 256, 128>}, {pipeline_mode = #tpu.pipeline_mode<synchronous>, transform_indices = @transform_6, window_bounds = array<i64: 1, 128>}, {transform_indices = @transform_7, window_bounds = array<i64: 8, 128>}]} {
    %c0 = arith.constant 0 : index
    %c0_0 = arith.constant 0 : index
    %0 = vector.load %arg1[%c0, %c0_0] : memref<8x784xf32, #tpu.memory_space<vmem>>, vector<8x784xf32>
    %1 = arith.truncf %0 : vector<8x784xf32> to vector<8x784xbf16>
    %c0_1 = arith.constant 0 : index
    %c0_2 = arith.constant 0 : index
    %2 = vector.load %arg2[%c0_1, %c0_2] : memref<784x256xbf16, #tpu.memory_space<vmem>>, vector<784x256xbf16>
    %cst = arith.constant dense<0.000000e+00> : vector<8x256xf32>
    %3 = tpu.matmul %1, %2, %cst {dimension_numbers = #tpu.dot_dimension_numbers<[1], [0], [0], [1], [0, 0, 1, 1], [], []>} : vector<8x784xbf16>, vector<784x256xbf16>, vector<8x256xf32> -> vector<8x256xf32>
    %c0_3 = arith.constant 0 : index
    %c0_4 = arith.constant 0 : index
    %4 = vector.load %arg3[%c0_3, %c0_4] : memref<1x256xf32, #tpu.memory_space<vmem>>, vector<1x256xf32>
    %5 = vector.broadcast %4 : vector<1x256xf32> to vector<8x256xf32>
    %6 = arith.addf %3, %5 : vector<8x256xf32>
    %cst_5 = arith.constant 0.000000e+00 : f32
    %7 = vector.broadcast %cst_5 : f32 to vector<8x256xf32>
    %8 = arith.maximumf %6, %7 : vector<8x256xf32>
    %9 = arith.truncf %8 : vector<8x256xf32> to vector<8x256xbf16>
    %c0_6 = arith.constant 0 : index
    %c0_7 = arith.constant 0 : index
    %10 = vector.load %arg4[%c0_6, %c0_7] : memref<256x256xbf16, #tpu.memory_space<vmem>>, vector<256x256xbf16>
    %cst_8 = arith.constant dense<0.000000e+00> : vector<8x256xf32>
    %11 = tpu.matmul %9, %10, %cst_8 {dimension_numbers = #tpu.dot_dimension_numbers<[1], [0], [0], [1], [0, 0, 1, 1], [], []>} : vector<8x256xbf16>, vector<256x256xbf16>, vector<8x256xf32> -> vector<8x256xf32>
    %c0_9 = arith.constant 0 : index
    %c0_10 = arith.constant 0 : index
    %12 = vector.load %arg5[%c0_9, %c0_10] : memref<1x256xf32, #tpu.memory_space<vmem>>, vector<1x256xf32>
    %13 = vector.broadcast %12 : vector<1x256xf32> to vector<8x256xf32>
    %14 = arith.addf %11, %13 : vector<8x256xf32>
    %cst_11 = arith.constant 0.000000e+00 : f32
    %15 = vector.broadcast %cst_11 : f32 to vector<8x256xf32>
    %16 = arith.maximumf %14, %15 : vector<8x256xf32>
    %17 = arith.truncf %16 : vector<8x256xf32> to vector<8x256xbf16>
    %c0_12 = arith.constant 0 : index
    %c0_13 = arith.constant 0 : index
    %18 = vector.load %arg6[%c0_12, %c0_13] : memref<256x128xbf16, #tpu.memory_space<vmem>>, vector<256x128xbf16>
    %cst_14 = arith.constant dense<0.000000e+00> : vector<8x128xf32>
    %19 = tpu.matmul %17, %18, %cst_14 {dimension_numbers = #tpu.dot_dimension_numbers<[1], [0], [0], [1], [0, 0, 1, 1], [], []>} : vector<8x256xbf16>, vector<256x128xbf16>, vector<8x128xf32> -> vector<8x128xf32>
    %c0_15 = arith.constant 0 : index
    %c0_16 = arith.constant 0 : index
    %20 = vector.load %arg7[%c0_15, %c0_16] : memref<1x128xf32, #tpu.memory_space<vmem>>, vector<1x128xf32>
    %21 = vector.broadcast %20 : vector<1x128xf32> to vector<8x128xf32>
    %22 = arith.addf %19, %21 : vector<8x128xf32>
    %23 = tpu.iota {dimensions = array<i32: 1>} : vector<8x128xi32>
    %c10_i32 = arith.constant 10 : i32
    %24 = vector.broadcast %c10_i32 : i32 to vector<8x128xi32>
    %25 = arith.cmpi slt, %23, %24 : vector<8x128xi32>
    %cst_17 = arith.constant -1.000000e+30 : f32
    %26 = vector.broadcast %cst_17 : f32 to vector<8x128xf32>
    %27 = arith.select %25, %22, %26 : vector<8x128xi1>, vector<8x128xf32>
    %cst_18 = arith.constant dense<0xFF800000> : vector<8xf32>
    %28 = vector.multi_reduction <maximumf>, %27, %cst_18 [1] : vector<8x128xf32> to vector<8xf32>
    %29 = vector.shape_cast %28 : vector<8xf32> to vector<8x1xf32>
    %30 = vector.broadcast %29 : vector<8x1xf32> to vector<8x128xf32>
    %31 = arith.subf %27, %30 : vector<8x128xf32>
    %32 = math.exp %31 : vector<8x128xf32>
    %cst_19 = arith.constant dense<0.000000e+00> : vector<8xf32>
    %33 = vector.multi_reduction <add>, %32, %cst_19 [1] : vector<8x128xf32> to vector<8xf32>
    %34 = vector.shape_cast %33 : vector<8xf32> to vector<8x1xf32>
    %35 = math.log %34 : vector<8x1xf32>
    %36 = vector.broadcast %35 : vector<8x1xf32> to vector<8x128xf32>
    %37 = arith.subf %31, %36 : vector<8x128xf32>
    %c0_20 = arith.constant 0 : index
    %c0_21 = arith.constant 0 : index
    %38 = vector.load %arg8[%c0_20, %c0_21] : memref<8x128xf32, #tpu.memory_space<vmem>>, vector<8x128xf32>
    tpu.vector_store %arg8[%c0_20, %c0_21], %37 {strides = array<i32>} : memref<8x128xf32, #tpu.memory_space<vmem>>, vector<8x128xf32>,
    return
  }
  func.func @transform_0(%arg0: i32) -> (i32, i32) {
    %c0_i32 = arith.constant 0 : i32
    %c0_i32_0 = arith.constant 0 : i32
    return %arg0, %c0_i32 : i32, i32
  }
  func.func @transform_1(%arg0: i32) -> (i32, i32) {
    %c0_i32 = arith.constant 0 : i32
    %c0_i32_0 = arith.constant 0 : i32
    %c0_i32_1 = arith.constant 0 : i32
    return %c0_i32, %c0_i32_0 : i32, i32
  }
  func.func @transform_2(%arg0: i32) -> (i32, i32) {
    %c0_i32 = arith.constant 0 : i32
    %c0_i32_0 = arith.constant 0 : i32
    %c0_i32_1 = arith.constant 0 : i32
    return %c0_i32, %c0_i32_0 : i32, i32
  }
  func.func @transform_3(%arg0: i32) -> (i32, i32) {
    %c0_i32 = arith.constant 0 : i32
    %c0_i32_0 = arith.constant 0 : i32
    %c0_i32_1 = arith.constant 0 : i32
    return %c0_i32, %c0_i32_0 : i32, i32
  }
  func.func @transform_4(%arg0: i32) -> (i32, i32) {
    %c0_i32 = arith.constant 0 : i32
    %c0_i32_0 = arith.constant 0 : i32
    %c0_i32_1 = arith.constant 0 : i32
    return %c0_i32, %c0_i32_0 : i32, i32
  }
  func.func @transform_5(%arg0: i32) -> (i32, i32) {
    %c0_i32 = arith.constant 0 : i32
    %c0_i32_0 = arith.constant 0 : i32
    %c0_i32_1 = arith.constant 0 : i32
    return %c0_i32, %c0_i32_0 : i32, i32
  }
  func.func @transform_6(%arg0: i32) -> (i32, i32) {
    %c0_i32 = arith.constant 0 : i32
    %c0_i32_0 = arith.constant 0 : i32
    %c0_i32_1 = arith.constant 0 : i32
    return %c0_i32, %c0_i32_0 : i32, i32
  }
  func.func @transform_7(%arg0: i32) -> (i32, i32) {
    %c0_i32 = arith.constant 0 : i32
    %c0_i32_0 = arith.constant 0 : i32
    return %arg0, %c0_i32 : i32, i32
  }
}

</mosaic_0001>

<bundles_post_ra>
// kernel: fully_connected_forward.1
= control target key start
LH: loop header
LB: loop body
LE: loop exit
PB: predicated region body
PF: predicated region fallthrough
CT: control target
= control target key end

     0   :  { %12 = vsyncpa [#allocation3], 0  ;;  %s1975_s0 = inlined_call_operand.hbm [shape: f32[8,784], index: 0, kind: input, shape index: {}]   ;;  %s1976_s1 = inlined_call_operand.hbm [shape: bf16[784,256], index: 1, kind: input, shape index: {}]   ;;  %s1977_s2 = inlined_call_operand.vmem [shape: f32[1,256], index: 2, kind: input, shape index: {}]   ;;  %s1978_s3 = inlined_call_operand.hbm [shape: bf16[256,256], index: 3, kind: input, shape index: {}]   ;;  %s1979_s4 = inlined_call_operand.vmem [shape: f32[1,256], index: 4, kind: input, shape index: {}]   ;;  %s1980_s5 = inlined_call_operand.hbm [shape: bf16[256,128], index: 5, kind: input, shape index: {}]   ;;  %s1981_s6 = inlined_call_operand.vmem [shape: f32[1,128], index: 6, kind: input, shape index: {}]   ;;  %s1982_s7 = inlined_call_operand.hbm [shape: f32[8,128], index: 7, kind: output, shape index: {}]  }
   0x1   :  { %13 = vsyncpa [#allocation6], 0 }
   0x2   :  { %14 = vsyncpa [#allocation9], 0 }
   0x3   :  { %15 = vsyncpa [#allocation4], 0  ;;  %s1848_s24 = smov [#allocation5]   ;;  %s1730_s28 = scalar_lea.hbm %s1976_s1, 12544 }
   0x4   :  { %s31_s25 = sshll.u32 %s1848_s24, 4  ;;  %p1731_p0 = scmp.ne.s32.totalorder %s1976_s1, %s1730_s28  ;;  %s32_s25 = int_to_ptr.vmem [resolvable:$true] %s31_s25 }
   0x5   :  { %p1734_p1 = scmp.lt.u32.totalorder %s1730_s28, %s1976_s1 }
   0x7   :  { %p1736_p2 = pnand %p1734_p1, %p1731_p0 }
   0x9   :  { %1739 = shalt.err (!%p1736_p2)
}
   0xa   :  { %s1740_s10 = scalar_lea.vmem %s32_s25, 12544  ;;  %p1745_p4 = scmp.lt.s32.totalorder %s32_s25, %s32_s25 }
   0xb   :  { %p1741_p3 = scmp.ne.s32.totalorder %s32_s25, %s1740_s10  ;;  %p1746_p5 = scmp.lt.s32.totalorder %s1740_s10, %s1740_s10 }
   0xd   :  { %p1747_p6 = por %p1746_p5, %p1745_p4 }
   0xf   :  { %p1748_p7 = pnand %p1747_p6, %p1741_p3 }
  0x11   :  { %1751 = shalt.err (!%p1748_p7)
}
  0x12   :  { %s1849_s11 = smov 128   ;;  %s1850_s12 = smov 8  }
  0x13   :  { %37 = dma.hbm_to_vmem [thread:$0]  %s1976_s1, 12544, %s32_s25, [#allocation6], %s1849_s11, %s1849_s11, %s1850_s12  }
  0x14   :  { %s1851_s15 = smov [#allocation2]   ;;  %s1852_s17 = smov [#allocation7]  }
  0x15   :  { %s22_s16 = sshll.u32 %s1851_s15, 4  ;;  %s45_s18 = sshll.u32 %s1852_s17, 4  ;;  %s23_s16 = int_to_ptr.vmem [resolvable:$true] %s22_s16  ;;  %s46_s18 = int_to_ptr.vmem [resolvable:$true] %s45_s18 }
  0x16   :  { %s1752_s21 = scalar_lea.hbm %s1975_s0, 896 }
  0x17   :  { %p1753_p8 = scmp.ne.s32.totalorder %s1975_s0, %s1752_s21  ;;  %p1756_p9 = scmp.lt.u32.totalorder %s1752_s21, %s1975_s0 }
  0x19   :  { %p1758_p10 = pnand %p1756_p9, %p1753_p8 }
  0x1b   :  { %1761 = shalt.err (!%p1758_p10)
}
  0x1c   :  { %s1762_s1 = scalar_lea.vmem %s23_s16, 896  ;;  %p1767_p12 = scmp.lt.s32.totalorder %s23_s16, %s23_s16 }
  0x1d   :  { %p1763_p11 = scmp.ne.s32.totalorder %s23_s16, %s1762_s1  ;;  %p1768_p13 = scmp.lt.s32.totalorder %s1762_s1, %s1762_s1 }
  0x1f   :  { %p1769_p0 = por %p1768_p13, %p1767_p12 }
  0x21   :  { %p1770_p1 = pnand %p1769_p0, %p1763_p11 }
  0x23   :  { %1773 = shalt.err (!%p1770_p1)
}
  0x24   :  { %25 = dma.hbm_to_vmem [thread:$0]  %s1975_s0, 896, %s23_s16, [#allocation3]  }
  0x25   :  { %s1774_s30 = scalar_lea.hbm %s1978_s3, 4096 }
  0x26   :  { %p1775_p2 = scmp.ne.s32.totalorder %s1978_s3, %s1774_s30  ;;  %p1778_p3 = scmp.lt.u32.totalorder %s1774_s30, %s1978_s3 }
  0x28   :  { %p1780_p4 = pnand %p1778_p3, %p1775_p2 }
  0x2a   :  { %1783 = shalt.err (!%p1780_p4)
}
  0x2b   :  { %s1784_s14 = scalar_lea.vmem %s46_s18, 4096  ;;  %p1789_p6 = scmp.lt.s32.totalorder %s46_s18, %s46_s18 }
  0x2c   :  { %p1785_p5 = scmp.ne.s32.totalorder %s46_s18, %s1784_s14  ;;  %p1790_p7 = scmp.lt.s32.totalorder %s1784_s14, %s1784_s14 }
  0x2e   :  { %p1791_p8 = por %p1790_p7, %p1789_p6 }
  0x30   :  { %p1792_p9 = pnand %p1791_p8, %p1785_p5 }
  0x32   :  { %1795 = shalt.err (!%p1792_p9)
}
  0x33   :  { %51 = dma.hbm_to_vmem [thread:$0]  %s1978_s3, 4096, %s46_s18, [#allocation6], %s1849_s11, %s1849_s11, %s1850_s12  }
  0x34   :  { %s1853_s16 = smov [#allocation8]   ;;  %s1796_s21 = scalar_lea.hbm %s1980_s5, 2048 }
  0x35   :  { %s59_s17 = sshll.u32 %s1853_s16, 4  ;;  %p1797_p10 = scmp.ne.s32.totalorder %s1980_s5, %s1796_s21  ;;  %s60_s17 = int_to_ptr.vmem [resolvable:$true] %s59_s17 }
  0x36   :  { %p1800_p11 = scmp.lt.u32.totalorder %s1796_s21, %s1980_s5 }
  0x38   :  { %p1802_p12 = pnand %p1800_p11, %p1797_p10 }
  0x3a   :  { %1805 = shalt.err (!%p1802_p12)
}
  0x3b   :  { %s1806_s1 = scalar_lea.vmem %s60_s17, 2048  ;;  %p1811_p0 = scmp.lt.s32.totalorder %s60_s17, %s60_s17 }
  0x3c   :  { %p1807_p13 = scmp.ne.s32.totalorder %s60_s17, %s1806_s1  ;;  %p1812_p1 = scmp.lt.s32.totalorder %s1806_s1, %s1806_s1 }
  0x3e   :  { %p1813_p2 = por %p1812_p1, %p1811_p0 }
  0x40   :  { %p1814_p3 = pnand %p1813_p2, %p1807_p13 }
  0x42   :  { %1817 = shalt.err (!%p1814_p3)
}
  0x43   :  { %s1854_s3 = smov 64   ;;  %s1855_s11 = smov 4  }
  0x44   :  { %65 = dma.hbm_to_vmem [thread:$0]  %s1980_s5, 2048, %s60_s17, [#allocation9], %s1854_s3, %s1854_s3, %s1855_s11  }
  0x45   :  { %1840 = dma.done.wait [#allocation3], 896  }
  0x46   :  { %1841 = vsyncadd [#allocation3], 4294966400 }
  0x47   :  { %1842 = dma.done.wait [#allocation6], 16640  }
  0x48   :  { %1843 = vsyncadd [#allocation6], 4294950656 }
  0x49   :  { %1844 = dma.done.wait [#allocation9], 2048  }
  0x4a   :  { %1845 = vsyncadd [#allocation9], 4294965248  ;;  %v1515_v0 = vld [vmem:[#allocation5 + $0x104] ss:$8 sps:$4 sm:$0xff]   ;;  %v1517_v1 = vld [vmem:[#allocation5 + $0x100] ss:$8 sps:$4 sm:$0xff]  }
  0x4b   :  { %740 = vmatprep.subr.bf16.mxu0 %v1515_v0  ;;  %v1518_v2 = vld [vmem:[#allocation5 + $0x114] ss:$8 sps:$4 sm:$0xff]   ;;  %v1520_v3 = vld [vmem:[#allocation5 + $0x110] ss:$8 sps:$4 sm:$0xff]   ;;  %v1521_v4 = vld [vmem:[#allocation5 + $0x124] ss:$8 sps:$4 sm:$0xff]  }
  0x4c   :  { %741 = vmatpush1.bf16.msra.mxu0 %v1517_v1  ;;  %v1523_v5 = vld [vmem:[#allocation5 + $0x120] ss:$8 sps:$4 sm:$0xff]   ;;  %v1524_v6 = vld [vmem:[#allocation5 + $0x134] ss:$8 sps:$4 sm:$0xff]   ;;  %v1526_v7 = vld [vmem:[#allocation5 + $0x130] ss:$8 sps:$4 sm:$0xff]  }
  0x4d   :  { %742 = vmatprep.subr.bf16.mxu0 %v1518_v2  ;;  %v1527_v8 = vld [vmem:[#allocation5 + $0x144] ss:$8 sps:$4 sm:$0xff]   ;;  %v1529_v9 = vld [vmem:[#allocation5 + $0x140] ss:$8 sps:$4 sm:$0xff]   ;;  %v1530_v10 = vld [vmem:[#allocation5 + $0x154] ss:$8 sps:$4 sm:$0xff]  }
  0x4e   :  { %v1532_v11 = vld [vmem:[#allocation5 + $0x150] ss:$8 sps:$4 sm:$0xff]   ;;  %v1533_v12 = vld [vmem:[#allocation5 + $0x164] ss:$8 sps:$4 sm:$0xff]   ;;  %v1535_v15 = vld [vmem:[#allocation5 + $0x160] ss:$8 sps:$4 sm:$0xff]  }
  0x4f   :  { %v84_v13 = vld [vmem:[#allocation2 + $0x18] sm:$0xff]  ;;  %v1536_v16 = vld [vmem:[#allocation5 + $0x174] ss:$8 sps:$4 sm:$0xff]   ;;  %v1538_v18 = vld [vmem:[#allocation5 + $0x170] ss:$8 sps:$4 sm:$0xff]   ;;  %vm695_vm0 = vcmask 130048  }
  0x50   :  { %743 = vmatpush1.bf16.msra.mxu0 %v1520_v3  ;;  %v91_v14 = vpack.c.bf16 %v84_v13, %v84_v13  ;;  %v1569_v17 = vld [vmem:[#allocation5 + $0x4] ss:$8 sps:$4 sm:$0xff]   ;;  %v1574_v20 = vld [vmem:[#allocation5] ss:$8 sps:$4 sm:$0xff]   ;;  %v1575_v21 = vld [vmem:[#allocation5 + $0x14] ss:$8 sps:$4 sm:$0xff]  }
  0x51   :  { %744 = vmatprep.subr.bf16.mxu0 %v1521_v4  ;;  %v1539_v19 = vld [vmem:[#allocation5 + $0x184] ss:$8 sps:$4 sm:$0xff]   ;;  %699 = vmatprep.subr.bf16.mxu1 %v1569_v17  ;;  %v1580_v22 = vld [vmem:[#allocation5 + $0x10] ss:$8 sps:$4 sm:$0xff]   ;;  %v1541_v24 = vld [vmem:[#allocation5 + $0x180] ss:$8 sps:$4 sm:$0xff]  }
  0x52   :  { %772 = vmatprep.mubr.bf16.mxu0 %v91_v14  ;;  %700 = vmatpush1.bf16.msra.mxu1 %v1574_v20  ;;  %v1581_v23 = vld [vmem:[#allocation5 + $0x24] ss:$8 sps:$4 sm:$0xff]   ;;  %v1542_v25 = vld [vmem:[#allocation5 + $0x194] ss:$8 sps:$4 sm:$0xff]   ;;  %v1586_v26 = vld [vmem:[#allocation5 + $0x20] ss:$8 sps:$4 sm:$0xff]  }
  0x53   :  { %701 = vmatprep.subr.bf16.mxu1 %v1575_v21  ;;  %v1587_v27 = vld [vmem:[#allocation5 + $0x34] ss:$8 sps:$4 sm:$0xff]   ;;  %v1544_v28 = vld [vmem:[#allocation5 + $0x190] ss:$8 sps:$4 sm:$0xff]   ;;  %v1545_v29 = vld [vmem:[#allocation5 + $0x1a4] ss:$8 sps:$4 sm:$0xff]  }
  0x54   :  { %745 = vmatpush1.bf16.msra.mxu0 %v1523_v5  ;;  %v1592_v30 = vld [vmem:[#allocation5 + $0x30] ss:$8 sps:$4 sm:$0xff]   ;;  %v1593_v31 = vld [vmem:[#allocation5 + $0x44] ss:$8 sps:$4 sm:$0xff]   ;;  %v1547_v32 = vld [vmem:[#allocation5 + $0x1a0] ss:$8 sps:$4 sm:$0xff]  }
  0x55   :  { %746 = vmatprep.subr.bf16.mxu0 %v1524_v6  ;;  %v1548_v33 = vld [vmem:[#allocation5 + $0x1b4] ss:$8 sps:$4 sm:$0xff]   ;;  %v1598_v34 = vld [vmem:[#allocation5 + $0x40] ss:$8 sps:$4 sm:$0xff]   ;;  %v1550_v36 = vld [vmem:[#allocation5 + $0x1b0] ss:$8 sps:$4 sm:$0xff]  }
  0x56   :  { %702 = vmatpush1.bf16.msra.mxu1 %v1580_v22  ;;  %v1599_v35 = vld [vmem:[#allocation5 + $0x54] ss:$8 sps:$4 sm:$0xff]   ;;  %v1551_v37 = vld [vmem:[#allocation5 + $0x1c4] ss:$8 sps:$4 sm:$0xff]   ;;  %v1604_v38 = vld [vmem:[#allocation5 + $0x50] ss:$8 sps:$4 sm:$0xff]  }
  0x57   :  { %703 = vmatprep.subr.bf16.mxu1 %v1581_v23  ;;  %v1605_v39 = vld [vmem:[#allocation5 + $0x64] ss:$8 sps:$4 sm:$0xff]   ;;  %v1553_v40 = vld [vmem:[#allocation5 + $0x1c0] ss:$8 sps:$4 sm:$0xff]   ;;  %v1554_v41 = vld [vmem:[#allocation5 + $0x1d4] ss:$8 sps:$4 sm:$0xff]  }
  0x58   :  { %747 = vmatpush1.bf16.msra.mxu0 %v1526_v7  ;;  %v1610_v42 = vld [vmem:[#allocation5 + $0x60] ss:$8 sps:$4 sm:$0xff]   ;;  %v1611_v43 = vld [vmem:[#allocation5 + $0x74] ss:$8 sps:$4 sm:$0xff]   ;;  %v1556_v44 = vld [vmem:[#allocation5 + $0x1d0] ss:$8 sps:$4 sm:$0xff]  }
  0x59   :  { %748 = vmatprep.subr.bf16.mxu0 %v1527_v8  ;;  %v1557_v45 = vld [vmem:[#allocation5 + $0x1e4] ss:$8 sps:$4 sm:$0xff]   ;;  %v1616_v46 = vld [vmem:[#allocation5 + $0x70] ss:$8 sps:$4 sm:$0xff]   ;;  %v1559_v48 = vld [vmem:[#allocation5 + $0x1e0] ss:$8 sps:$4 sm:$0xff]  }
  0x5a   :  { %704 = vmatpush1.bf16.msra.mxu1 %v1586_v26  ;;  %v1617_v47 = vld [vmem:[#allocation5 + $0x84] ss:$8 sps:$4 sm:$0xff]   ;;  %v1560_v49 = vld [vmem:[#allocation5 + $0x1f4] ss:$8 sps:$4 sm:$0xff]   ;;  %v1622_v50 = vld [vmem:[#allocation5 + $0x80] ss:$8 sps:$4 sm:$0xff]  }
  0x5b   :  { %705 = vmatprep.subr.bf16.mxu1 %v1587_v27  ;;  %v1562_v51 = vld [vmem:[#allocation5 + $0x1f0] ss:$8 sps:$4 sm:$0xff]   ;;  %v1623_v52 = vld [vmem:[#allocation5 + $0x94] ss:$8 sps:$4 sm:$0xff]   ;;  %v1565_v54 = vld [vmem:[#allocation5 + $0x204] ss:$8 sps:$4 sm:$0xff]  }
  0x5c   :  { %749 = vmatpush1.bf16.msra.mxu0 %v1529_v9  ;;  %v83_v53 = vld [vmem:[#allocation2 + $0x10] sm:$0xff]  ;;  %v1629_v56 = vld [vmem:[#allocation5 + $0xa4] ss:$8 sps:$4 sm:$0xff]   ;;  %v86_v58 = vld [vmem:[#allocation2 + $0x28] sm:$0xff]  ;;  %s1857_s29 = smov [#allocation10]  }
  0x5d   :  { %750 = vmatprep.subr.bf16.mxu0 %v1530_v10  ;;  %v1628_v55 = vld [vmem:[#allocation5 + $0x90] ss:$8 sps:$4 sm:$0xff]   ;;  %v90_v57 = vpack.c.bf16 %v83_v53, %v83_v53  ;;  %v1563_v59 = vld [vmem:[#allocation5 + $0x200] ss:$8 sps:$4 sm:$0xff]   ;;  %v93_v60 = vpack.c.bf16 %v86_v58, %v86_v58  ;;  %v1568_v61 = vld [vmem:[#allocation5 + $0x214] ss:$8 sps:$4 sm:$0xff]  }
  0x5e   :  { %706 = vmatpush1.bf16.msra.mxu1 %v1592_v30  ;;  %v1634_v62 = vld [vmem:[#allocation5 + $0xa0] ss:$8 sps:$4 sm:$0xff]   ;;  %v1635_v63 = vld [vmem:[#allocation5 + $0xb4] ss:$8 sps:$4 sm:$0xff]   ;;  %v1566_v1 = vld [vmem:[#allocation5 + $0x210] ss:$8 sps:$4 sm:$0xff]  }
  0x5f   :  { %707 = vmatprep.subr.bf16.mxu1 %v1593_v31  ;;  %v82_v0 = vld [vmem:[#allocation2 + $0x8] sm:$0xff]  ;;  %v1573_v3 = vld [vmem:[#allocation5 + $0x224] ss:$8 sps:$4 sm:$0xff]   ;;  %v1571_v6 = vld [vmem:[#allocation5 + $0x220] ss:$8 sps:$4 sm:$0xff]   ;;  %s1312_s30 = sshll.u32 %s1857_s29, 4  ;;  %s1313_s30 = int_to_ptr.vmem [resolvable:$true] %s1312_s30 }
  0x60   :  { %751 = vmatpush1.bf16.msra.mxu0 %v1532_v11  ;;  %v89_v2 = vpack.c.bf16 %v82_v0, %v82_v0  ;;  %v1640_v4 = vld [vmem:[#allocation5 + $0xb0] ss:$8 sps:$4 sm:$0xff]   ;;  %v1641_v5 = vld [vmem:[#allocation5 + $0xc4] ss:$8 sps:$4 sm:$0xff]   ;;  %v1579_v7 = vld [vmem:[#allocation5 + $0x234] ss:$8 sps:$4 sm:$0xff]   ;;  %p1823_p5 = scmp.lt.s32.totalorder %s1313_s30, %s1313_s30 }
  0x61   :  { %752 = vmatprep.subr.bf16.mxu0 %v1533_v12  ;;  %v1646_v8 = vld [vmem:[#allocation5 + $0xc0] ss:$8 sps:$4 sm:$0xff]   ;;  %v1647_v9 = vld [vmem:[#allocation5 + $0xd4] ss:$8 sps:$4 sm:$0xff]   ;;  %v1577_v10 = vld [vmem:[#allocation5 + $0x230] ss:$8 sps:$4 sm:$0xff]  }
  0x62   :  { %708 = vmatpush1.bf16.msra.mxu1 %v1598_v34  ;;  %731 = vmatprep.mubr.bf16.mxu1 %v89_v2  ;;  %v1585_v11 = vld [vmem:[#allocation5 + $0x244] ss:$8 sps:$4 sm:$0xff]   ;;  %v1652_v12 = vld [vmem:[#allocation5 + $0xd0] ss:$8 sps:$4 sm:$0xff]   ;;  %v1583_v14 = vld [vmem:[#allocation5 + $0x240] ss:$8 sps:$4 sm:$0xff]  }
  0x63   :  { %709 = vmatprep.subr.bf16.mxu1 %v1599_v35  ;;  %v1653_v13 = vld [vmem:[#allocation5 + $0xe4] ss:$8 sps:$4 sm:$0xff]   ;;  %v1659_v17 = vld [vmem:[#allocation5 + $0xf4] ss:$8 sps:$4 sm:$0xff]   ;;  %v1661_v20 = vld [vmem:[#allocation5 + $0xf0] ss:$8 sps:$4 sm:$0xff]  }
  0x64   :  { %753 = vmatpush1.bf16.msra.mxu0 %v1535_v15  ;;  %v1591_v15 = vld [vmem:[#allocation5 + $0x254] ss:$8 sps:$4 sm:$0xff]   ;;  %v81_v21 = vld [vmem:[#allocation2] sm:$0xff]  ;;  %v1668_v34 = vld [vmem:[#allocation7 + $0x20] ss:$8 sps:$4 sm:$0xff]  }
  0x65   :  { %754 = vmatprep.subr.bf16.mxu0 %v1536_v16  ;;  %v1658_v16 = vld [vmem:[#allocation5 + $0xe0] ss:$8 sps:$4 sm:$0xff]   ;;  %v1664_v23 = vld [vmem:[#allocation7 + $0x4] ss:$8 sps:$4 sm:$0xff]   ;;  %v88_v26 = vpack.c.bf16 %v81_v21, %v81_v21  ;;  %v1667_v27 = vld [vmem:[#allocation7 + $0x14] ss:$8 sps:$4 sm:$0xff]  }
  0x66   :  { %710 = vmatpush1.bf16.msra.mxu1 %v1604_v38  ;;  %v1595_v22 = vld [vmem:[#allocation5 + $0x260] ss:$8 sps:$4 sm:$0xff]   ;;  %v1670_v31 = vld [vmem:[#allocation7 + $0x24] ss:$8 sps:$4 sm:$0xff]   ;;  %v1673_v35 = vld [vmem:[#allocation7 + $0x34] ss:$8 sps:$4 sm:$0xff]  }
  0x67   :  { %711 = vmatprep.subr.bf16.mxu1 %v1605_v39  ;;  %v1665_v30 = vld [vmem:[#allocation7 + $0x10] ss:$8 sps:$4 sm:$0xff]   ;;  %v1676_v39 = vld [vmem:[#allocation7 + $0x44] ss:$8 sps:$4 sm:$0xff]   ;;  %v1645_v53 = vld [vmem:[#allocation5 + $0x2e4] ss:$8 sps:$4 sm:$0xff]  }
  0x68   :  { %755 = vmatpush1.bf16.msra.mxu0 %v1538_v18  ;;  %v1589_v18 = vld [vmem:[#allocation5 + $0x250] ss:$8 sps:$4 sm:$0xff]   ;;  %v1671_v38 = vld [vmem:[#allocation7 + $0x30] ss:$8 sps:$4 sm:$0xff]  }
  0x69   :  { %756 = vmatprep.subr.bf16.mxu0 %v1539_v19  ;;  %v1597_v19 = vld [vmem:[#allocation5 + $0x264] ss:$8 sps:$4 sm:$0xff]   ;;  %v1686_v58 = vld [vmem:[#allocation7 + $0x80] ss:$8 sps:$4 sm:$0xff]   ;;  %v1655_v2 = vld [vmem:[#allocation5 + $0x300] ss:$8 sps:$4 sm:$0xff]  }
  0x6a   :  { %712 = vmatpush1.bf16.msra.mxu1 %v1610_v42  ;;  %v1674_v42 = vld [vmem:[#allocation7 + $0x40] ss:$8 sps:$4 sm:$0xff]  }
  0x6b   :  { %713 = vmatprep.subr.bf16.mxu1 %v1611_v43  ;;  %v1679_v43 = vld [vmem:[#allocation7 + $0x54] ss:$8 sps:$4 sm:$0xff]  }
  0x6c   :  { %757 = vmatpush1.bf16.msra.mxu0 %v1541_v24  ;;  %v1603_v24 = vld [vmem:[#allocation5 + $0x274] ss:$8 sps:$4 sm:$0xff]  }
  0x6d   :  { %758 = vmatprep.subr.bf16.mxu0 %v1542_v25  ;;  %v1662_v25 = vld [vmem:[#allocation7] ss:$8 sps:$4 sm:$0xff]  }
  0x6e   :  { %714 = vmatpush1.bf16.msra.mxu1 %v1616_v46  ;;  %v1677_v46 = vld [vmem:[#allocation7 + $0x50] ss:$8 sps:$4 sm:$0xff]  }
  0x6f   :  { %715 = vmatprep.subr.bf16.mxu1 %v1617_v47  ;;  %v1682_v47 = vld [vmem:[#allocation7 + $0x64] ss:$8 sps:$4 sm:$0xff]  }
  0x70   :  { %759 = vmatpush1.bf16.msra.mxu0 %v1544_v28  ;;  %v1601_v28 = vld [vmem:[#allocation5 + $0x270] ss:$8 sps:$4 sm:$0xff]  }
  0x71   :  { %760 = vmatprep.subr.bf16.mxu0 %v1545_v29  ;;  %v1609_v29 = vld [vmem:[#allocation5 + $0x284] ss:$8 sps:$4 sm:$0xff]  }
  0x72   :  { %716 = vmatpush1.bf16.msra.mxu1 %v1622_v50  ;;  %v1680_v50 = vld [vmem:[#allocation7 + $0x60] ss:$8 sps:$4 sm:$0xff]  }
  0x73   :  { %717 = vmatprep.subr.bf16.mxu1 %v1623_v52  ;;  %v1637_v52 = vld [vmem:[#allocation5 + $0x2d0] ss:$8 sps:$4 sm:$0xff]  }
  0x74   :  { %761 = vmatpush1.bf16.msra.mxu0 %v1547_v32  ;;  %v1607_v32 = vld [vmem:[#allocation5 + $0x280] ss:$8 sps:$4 sm:$0xff]  }
  0x75   :  { %762 = vmatprep.subr.bf16.mxu0 %v1548_v33  ;;  %v1615_v33 = vld [vmem:[#allocation5 + $0x294] ss:$8 sps:$4 sm:$0xff]  }
  0x76   :  { %718 = vmatpush1.bf16.msra.mxu1 %v1628_v55  ;;  %v1688_v55 = vld [vmem:[#allocation7 + $0x84] ss:$8 sps:$4 sm:$0xff]  }
  0x77   :  { %719 = vmatprep.subr.bf16.mxu1 %v1629_v56  ;;  %v1643_v56 = vld [vmem:[#allocation5 + $0x2e0] ss:$8 sps:$4 sm:$0xff]  }
  0x78   :  { %763 = vmatpush1.bf16.msra.mxu0 %v1550_v36  ;;  %v1613_v36 = vld [vmem:[#allocation5 + $0x290] ss:$8 sps:$4 sm:$0xff]  }
  0x79   :  { %764 = vmatprep.subr.bf16.mxu0 %v1551_v37  ;;  %v1621_v37 = vld [vmem:[#allocation5 + $0x2a4] ss:$8 sps:$4 sm:$0xff]  }
  0x7a   :  { %720 = vmatpush1.bf16.msra.mxu1 %v1634_v62  ;;  %v1657_v62 = vld [vmem:[#allocation5 + $0x304] ss:$8 sps:$4 sm:$0xff]  }
  0x7b   :  { %721 = vmatprep.subr.bf16.mxu1 %v1635_v63  ;;  %v1689_v63 = vld [vmem:[#allocation7 + $0x90] ss:$8 sps:$4 sm:$0xff]  }
  0x7c   :  { %765 = vmatpush1.bf16.msra.mxu0 %v1553_v40  ;;  %v1619_v40 = vld [vmem:[#allocation5 + $0x2a0] ss:$8 sps:$4 sm:$0xff]  }
  0x7d   :  { %766 = vmatprep.subr.bf16.mxu0 %v1554_v41  ;;  %v1627_v41 = vld [vmem:[#allocation5 + $0x2b4] ss:$8 sps:$4 sm:$0xff]  }
  0x7e   :  { %722 = vmatpush1.bf16.msra.mxu1 %v1640_v4  ;;  %v1697_v4 = vld [vmem:[#allocation7 + $0xb4] ss:$8 sps:$4 sm:$0xff]  }
  0x7f   :  { %723 = vmatprep.subr.bf16.mxu1 %v1641_v5  ;;  %v1856_v5 = vmov 0  }
  0x80   :  { %767 = vmatpush1.bf16.msra.mxu0 %v1556_v44  ;;  %v1625_v44 = vld [vmem:[#allocation5 + $0x2b0] ss:$8 sps:$4 sm:$0xff]  }
  0x81   :  { %768 = vmatprep.subr.bf16.mxu0 %v1557_v45  ;;  %v1633_v45 = vld [vmem:[#allocation5 + $0x2c4] ss:$8 sps:$4 sm:$0xff]  }
  0x82   :  { %724 = vmatpush1.bf16.msra.mxu1 %v1646_v8  ;;  %v87_v8 = vld [vmem:[#allocation2 + $0x30] sm:$0xff] }
  0x83   :  { %725 = vmatprep.subr.bf16.mxu1 %v1647_v9  ;;  %v1698_v9 = vld [vmem:[#allocation7 + $0xc0] ss:$8 sps:$4 sm:$0xff]  }
  0x84   :  { %769 = vmatpush1.bf16.msra.mxu0 %v1559_v48  ;;  %v1631_v48 = vld [vmem:[#allocation5 + $0x2c0] ss:$8 sps:$4 sm:$0xff]  }
  0x85   :  { %770 = vmatprep.subr.bf16.mxu0 %v1560_v49  ;;  %v1639_v49 = vld [vmem:[#allocation5 + $0x2d4] ss:$8 sps:$4 sm:$0xff]  }
  0x86   :  { %726 = vmatpush1.bf16.msra.mxu1 %v1652_v12  ;;  %v1703_v12 = vld [vmem:[#allocation7 + $0xd4] ss:$8 sps:$4 sm:$0xff]  }
  0x87   :  { %727 = vmatprep.subr.bf16.mxu1 %v1653_v13  ;;  %v1706_v13 = vld [vmem:[#allocation7 + $0xe4] ss:$8 sps:$4 sm:$0xff]  }
  0x88   :  { %771 = vmatpush1.bf16.msra.mxu0 %v1562_v51  ;;  %v1685_v51 = vld [vmem:[#allocation7 + $0x74] ss:$8 sps:$4 sm:$0xff]  }
  0x89   :  { %781 = vmatprep.subr.bf16.mxu0 %v1565_v54  ;;  %v1683_v54 = vld [vmem:[#allocation7 + $0x70] ss:$8 sps:$4 sm:$0xff]  }
  0x8a   :  { %728 = vmatpush1.bf16.msra.mxu1 %v1658_v16  ;;  %v1707_v16 = vld [vmem:[#allocation7 + $0xf0] ss:$8 sps:$4 sm:$0xff]  }
  0x8b   :  { %773 = vmatmul.mubr.bf16.vlgmr.msra.gmra.mrb[0].mxu0 %v90_v57  ;;  %729 = vmatprep.subr.bf16.mxu1 %v1659_v17  ;;  %v1651_v57 = vld [vmem:[#allocation5 + $0x2f4] ss:$8 sps:$4 sm:$0xff]  }
  0x8c   :  { %782 = vmatpush1.bf16.msra.mxu0 %v1563_v59  ;;  %813 = vmatprep.mubr.bf16.mxu0 %v93_v60  ;;  %v1691_v59 = vld [vmem:[#allocation7 + $0x94] ss:$8 sps:$4 sm:$0xff]   ;;  %v1649_v60 = vld [vmem:[#allocation5 + $0x2f0] ss:$8 sps:$4 sm:$0xff]  }
  0x8d   :  { %783 = vmatprep.subr.bf16.mxu0 %v1568_v61  ;;  %v85_v61 = vld [vmem:[#allocation2 + $0x20] sm:$0xff]  ;;  %v1710_v17 = vld [vmem:[#allocation8 + $0x40] sm:$0xff]  }
  0x8e   :  { %730 = vmatpush1.bf16.msra.mxu1 %v1661_v20  ;;  %v92_v0 = vpack.c.bf16 %v85_v61, %v85_v61 }
  0x8f   :  { %1071 = vmatprep.subr.bf16.mxu1 %v1664_v23 }
  0x90   :  { %784 = vmatpush1.bf16.msra.mxu0 %v1566_v1  ;;  %v1694_v1 = vld [vmem:[#allocation7 + $0xa4] ss:$8 sps:$4 sm:$0xff]  }
  0x91   :  { %785 = vmatprep.subr.bf16.mxu0 %v1573_v3  ;;  %732 = vmatmul.mubr.bf16.vlgmr.msra.gmra.mrb[0].mxu1 %v88_v26  ;;  %v1692_v3 = vld [vmem:[#allocation7 + $0xa0] ss:$8 sps:$4 sm:$0xff]  }
  0x92   :  { %1072 = vmatpush1.bf16.msra.mxu1 %v1662_v25  ;;  %v193_v25 = vld [vmem:[%s1977_s2] sm:$0x3] }
  0x93   :  { %1073 = vmatprep.subr.bf16.mxu1 %v1667_v27 }
  0x94   :  { %786 = vmatpush1.bf16.msra.mxu0 %v1571_v6  ;;  %v1695_v6 = vld [vmem:[#allocation7 + $0xb0] ss:$8 sps:$4 sm:$0xff]  }
  0x95   :  { %787 = vmatprep.subr.bf16.mxu0 %v1579_v7  ;;  %v1700_v7 = vld [vmem:[#allocation7 + $0xc4] ss:$8 sps:$4 sm:$0xff]  }
  0x96   :  { %1074 = vmatpush1.bf16.msra.mxu1 %v1665_v30 }
  0x97   :  { %1075 = vmatprep.subr.bf16.mxu1 %v1670_v31 }
  0x98   :  { %788 = vmatpush1.bf16.msra.mxu0 %v1577_v10  ;;  %v94_v10 = vpack.c.bf16 %v87_v8, %v87_v8  ;;  %v1454_v8 = vld [vmem:[%s1981_s6] ss:$0 sm:$0xff]  ;;  %s1818_s6 = scalar_lea.vmem %s1313_s30, 128 }
  0x99   :  { %789 = vmatprep.subr.bf16.mxu0 %v1585_v11  ;;  %v1701_v11 = vld [vmem:[#allocation7 + $0xd0] ss:$8 sps:$4 sm:$0xff]   ;;  %p1819_p4 = scmp.ne.s32.totalorder %s1313_s30, %s1818_s6  ;;  %p1824_p6 = scmp.lt.s32.totalorder %s1818_s6, %s1818_s6 }
  0x9a   :  { %1076 = vmatpush1.bf16.msra.mxu1 %v1668_v34 }
  0x9b   :  { %1077 = vmatprep.subr.bf16.mxu1 %v1673_v35  ;;  %p1825_p7 = por %p1824_p6, %p1823_p5 }
  0x9c   :  { %790 = vmatpush1.bf16.msra.mxu0 %v1583_v14  ;;  %v1704_v14 = vld [vmem:[#allocation7 + $0xe0] ss:$8 sps:$4 sm:$0xff]  }
  0x9d   :  { %791 = vmatprep.subr.bf16.mxu0 %v1591_v15  ;;  %v1709_v15 = vld [vmem:[#allocation7 + $0xf4] ss:$8 sps:$4 sm:$0xff]   ;;  %p1826_p8 = pnand %p1825_p7, %p1819_p4 }
  0x9e   :  { %1078 = vmatpush1.bf16.msra.mxu1 %v1671_v38 }
  0x9f   :  { %1079 = vmatprep.subr.bf16.mxu1 %v1676_v39 }
  0xa0   :  { %792 = vmatpush1.bf16.msra.mxu0 %v1589_v18 }
  0xa1   :  { %793 = vmatprep.subr.bf16.mxu0 %v1597_v19 }
  0xa2   :  { %1080 = vmatpush1.bf16.msra.mxu1 %v1674_v42  ;;  %v1712_v42 = vld [vmem:[#allocation8 + $0x48] sm:$0xff]  }
  0xa3   :  { %1081 = vmatprep.subr.bf16.mxu1 %v1679_v43  ;;  %v1713_v43 = vld [vmem:[#allocation8 + $0x8] sm:$0xff]  }
  0xa4   :  { %794 = vmatpush1.bf16.msra.mxu0 %v1595_v22  ;;  %v195_v22 = vlaneseq }
  0xa5   :  { %795 = vmatprep.subr.bf16.mxu0 %v1603_v24 }
  0xa6   :  { %1082 = vmatpush1.bf16.msra.mxu1 %v1677_v46  ;;  %v196_v23 = vshrl.u32 %v195_v22, 7  ;;  %v1716_v46 = vld [vmem:[#allocation8 + $0x58] sm:$0xff]  }
  0xa7   :  { %1083 = vmatprep.subr.bf16.mxu1 %v1682_v47  ;;  %v1717_v47 = vld [vmem:[#allocation8 + $0x18] sm:$0xff]  }
  0xa8   :  { %796 = vmatpush1.bf16.msra.mxu0 %v1601_v28  ;;  %v197_v24 = vsub.s32 0, %v196_v23  ;;  %v201_v26 = vsub.s32 1, %v196_v23 }
  0xa9   :  { %797 = vmatprep.subr.bf16.mxu0 %v1609_v29 }
  0xaa   :  { %1084 = vmatpush1.bf16.msra.mxu1 %v1680_v50  ;;  %v198_v27 = vrot.slane %v193_v25, %v197_v24  ;;  %v202_v28 = vrot.slane %v193_v25, %v201_v26  ;;  %v1720_v50 = vld [vmem:[#allocation8 + $0x68] sm:$0xff]  }
  0xab   :  { %1085 = vmatprep.subr.bf16.mxu1 %v1685_v51  ;;  %v1721_v51 = vld [vmem:[#allocation8 + $0x28] sm:$0xff]  }
  0xac   :  { %798 = vmatpush1.bf16.msra.mxu0 %v1607_v32 }
  0xad   :  { %799 = vmatprep.subr.bf16.mxu0 %v1615_v33 }
  0xae   :  { %1086 = vmatpush1.bf16.msra.mxu1 %v1683_v54  ;;  %v1724_v54 = vld [vmem:[#allocation8 + $0x78] sm:$0xff]  }
  0xaf   :  { %1087 = vmatprep.subr.bf16.mxu1 %v1688_v55  ;;  %v1725_v55 = vld [vmem:[#allocation8 + $0x38] sm:$0xff]  }
  0xb0   :  { %800 = vmatpush1.bf16.msra.mxu0 %v1613_v36 }
  0xb1   :  { %801 = vmatprep.subr.bf16.mxu0 %v1621_v37 }
  0xb2   :  { %1088 = vmatpush1.bf16.msra.mxu1 %v1686_v58 }
  0xb3   :  { %1089 = vmatprep.subr.bf16.mxu1 %v1691_v59 }
  0xb4   :  { %802 = vmatpush1.bf16.msra.mxu0 %v1619_v40  ;;  %v1711_v40 = vld [vmem:[#allocation8] sm:$0xff]  }
  0xb5   :  { %803 = vmatprep.subr.bf16.mxu0 %v1627_v41 }
  0xb6   :  { %1090 = vmatpush1.bf16.msra.mxu1 %v1689_v63 }
  0xb7   :  { %1091 = vmatprep.subr.bf16.mxu1 %v1694_v1 }
  0xb8   :  { %804 = vmatpush1.bf16.msra.mxu0 %v1625_v44  ;;  %v1714_v44 = vld [vmem:[#allocation8 + $0x50] sm:$0xff]  }
  0xb9   :  { %805 = vmatprep.subr.bf16.mxu0 %v1633_v45  ;;  %v1715_v45 = vld [vmem:[#allocation8 + $0x10] sm:$0xff]  }
  0xba   :  { %1092 = vmatpush1.bf16.msra.mxu1 %v1692_v3 }
  0xbb   :  { %1093 = vmatprep.subr.bf16.mxu1 %v1697_v4 }
  0xbc   :  { %806 = vmatpush1.bf16.msra.mxu0 %v1631_v48  ;;  %v1718_v48 = vld [vmem:[#allocation8 + $0x60] sm:$0xff]  }
  0xbd   :  { %807 = vmatprep.subr.bf16.mxu0 %v1639_v49  ;;  %v1719_v49 = vld [vmem:[#allocation8 + $0x20] sm:$0xff]  }
  0xbe   :  { %1094 = vmatpush1.bf16.msra.mxu1 %v1695_v6 }
  0xbf   :  { %1095 = vmatprep.subr.bf16.mxu1 %v1700_v7 }
  0xc0   :  { %808 = vmatpush1.bf16.msra.mxu0 %v1637_v52  ;;  %v1722_v52 = vld [vmem:[#allocation8 + $0x70] sm:$0xff]  }
  0xc1   :  { %809 = vmatprep.subr.bf16.mxu0 %v1645_v53  ;;  %v1723_v53 = vld [vmem:[#allocation8 + $0x30] sm:$0xff]  }
  0xc2   :  { %1096 = vmatpush1.bf16.msra.mxu1 %v1698_v9 }
  0xc3   :  { %1097 = vmatprep.subr.bf16.mxu1 %v1703_v12 }
  0xc4   :  { %810 = vmatpush1.bf16.msra.mxu0 %v1643_v56  ;;  %v899_v56 = vld [vmem:[%s1979_s4] sm:$0x3] }
  0xc5   :  { %811 = vmatprep.subr.bf16.mxu0 %v1651_v57  ;;  %v904_v57 = vrot.slane %v899_v56, %v197_v24  ;;  %v908_v58 = vrot.slane %v899_v56, %v201_v26 }
  0xc6   :  { %1098 = vmatpush1.bf16.msra.mxu1 %v1701_v11 }
  0xc7   :  { %1099 = vmatprep.subr.bf16.mxu1 %v1706_v13 }
  0xc8   :  { %812 = vmatpush1.bf16.msra.mxu0 %v1649_v60 }
  0xc9   :  { %822 = vmatprep.subr.bf16.mxu0 %v1657_v62 }
  0xca   :  { %1100 = vmatpush1.bf16.msra.mxu1 %v1704_v14 }
  0xcb   :  { %814 = vmatmul.mubr.bf16.vlgmr.msra.gmra.mrb[0].mxu0 %v92_v0  ;;  %1101 = vmatprep.subr.bf16.mxu1 %v1709_v15 }
  0xcc   :  { %823 = vmatpush1.bf16.msra.mxu0 %v1655_v2  ;;  %854 = vmatprep.mubr.bf16.mxu0 %v1856_v5  ;;  %v1292_v5 = vand.u32 127, %v195_v22 }
  0xce   :  { %1102 = vmatpush1.bf16.msra.mxu1 %v1707_v16  ;;  %vm1293_vm1 = vcmp.lt.s32.totalorder %v1292_v5, 10 }
  0xcf   :  { %1471 = vmatprep.subr.bf16.mxu1 %v1710_v17 }
  0xd7   :  { %1421 = vmatmul.mubr.msk.bf16.vlgmr.msra.gmra.mrb[0].mxu0 %vm695_vm0, %v94_v10 }
 0x164   :  { %v733_v18 = vpop.f32.mrb[0].mxu1 }
 0x165   :  { %v735_v19 = vpop.f32.mrb[1].mxu1  ;;  %v734_v29 = vadd.f32 %v733_v18, %v198_v27 }
 0x166   :  { %v737_v20 = vpop.f32.mrb[2].mxu1  ;;  %v736_v30 = vadd.f32 %v735_v19, %v202_v28 }
 0x167   :  { %v738_v21 = vpop.f32.mrb[3].mxu1 }
 0x1aa   :  { %v856_v31 = vpop.f32.mrb[0].mxu0 }
 0x1ab   :  { %v1494_v32 = vadd.f32 %v856_v31, %v734_v29  ;;  %v858_v33 = vpop.f32.mrb[1].mxu0 }
 0x1ac   :  { %v1496_v34 = vadd.f32 %v858_v33, %v736_v30  ;;  %v860_v35 = vpop.f32.mrb[2].mxu0 }
 0x1ad   :  { %v863_v36 = vmax.f32 %v1494_v32, 0.0  ;;  %v861_v37 = vpop.f32.mrb[3].mxu0 }
 0x1ae   :  { %v864_v38 = vmax.f32 %v1496_v34, 0.0 }
 0x1af   :  { %v865_v41 = vpack.c.bf16 %v863_v36, %v863_v36 }
 0x1b0   :  { %v866_v39 = vpack.c.bf16 %v864_v38, %v864_v38 }
 0x1b2   :  { %1103 = vmatprep.mubr.bf16.mxu1 %v866_v39 }
 0x1b3   :  { %1104 = vmatmul.mubr.bf16.vlgmr.msra.gmra.mrb[4].mxu1 %v865_v41 }
 0x1b4   :  { %1472 = vmatpush3.bf16.msra.mxu1 %v1711_v40 }
 0x1b5   :  { %1473 = vmatprep.subr.bf16.mxu1 %v1712_v42 }
 0x1b8   :  { %1474 = vmatpush3.bf16.msra.mxu1 %v1713_v43 }
 0x1b9   :  { %1475 = vmatprep.subr.bf16.mxu1 %v1714_v44 }
 0x1bc   :  { %1476 = vmatpush3.bf16.msra.mxu1 %v1715_v45 }
 0x1bd   :  { %1477 = vmatprep.subr.bf16.mxu1 %v1716_v46 }
 0x1c0   :  { %1478 = vmatpush3.bf16.msra.mxu1 %v1717_v47 }
 0x1c1   :  { %1479 = vmatprep.subr.bf16.mxu1 %v1718_v48 }
 0x1c4   :  { %1480 = vmatpush3.bf16.msra.mxu1 %v1719_v49 }
 0x1c5   :  { %1481 = vmatprep.subr.bf16.mxu1 %v1720_v50 }
 0x1c8   :  { %1482 = vmatpush3.bf16.msra.mxu1 %v1721_v51 }
 0x1c9   :  { %1483 = vmatprep.subr.bf16.mxu1 %v1722_v52 }
 0x1cc   :  { %1484 = vmatpush3.bf16.msra.mxu1 %v1723_v53 }
 0x1cd   :  { %1485 = vmatprep.subr.bf16.mxu1 %v1724_v54 }
 0x1d0   :  { %1486 = vmatpush3.bf16.msra.mxu1 %v1725_v55 }
 0x286   :  { %v1105_v59 = vpop.f32.mrb[4].mxu1 }
 0x287   :  { %v1106_v60 = vadd.f32 %v1105_v59, %v904_v57  ;;  %v1107_v61 = vpop.f32.mrb[5].mxu1 }
 0x288   :  { %v1108_v62 = vadd.f32 %v1107_v61, %v908_v58  ;;  %v1109_v63 = vpop.f32.mrb[6].mxu1 }
 0x289   :  { %v1112_v0 = vmax.f32 %v1106_v60, 0.0  ;;  %v1110_v1 = vpop.f32.mrb[7].mxu1 }
 0x28a   :  { %v1113_v2 = vmax.f32 %v1108_v62, 0.0 }
 0x28b   :  { %v1114_v4 = vpack.c.bf16 %v1112_v0, %v1112_v0 }
 0x28c   :  { %v1115_v3 = vpack.c.bf16 %v1113_v2, %v1113_v2 }
 0x28e   :  { %1283 = vmatprep.mubr.bf16.mxu1 %v1115_v3 }
 0x28f   :  { %1284 = vmatmul.mubr.bf16.vlgmr.msra.gmra.mrb[8].mxu1 %v1114_v4 }
 0x362   :  { %v1487_v6 = vpop.f32.mrb[8].mxu1 }
 0x363   :  { %v1488_v7 = vpop.f32.mrb[9].mxu1 }
 0x364   :  { %v1489_v9 = vadd.f32 %v1488_v7, %v1487_v6  ;;  %v1490_v10 = vpop.f32.mrb[10].mxu1 }
 0x365   :  { %v1491_v11 = vpop.f32.mrb[11].mxu1 }
 0x366   :  { %v1286_v12 = vadd.f32 %v1489_v9, %v1454_v8 }
 0x368   :  { %v1294_v13 = vsel %vm1293_vm1, %v1286_v12, -1e+30 }
 0x369   :  { %1295 = vmax.xlane.f32.xlu0 %v1294_v13 }
 0x3f6   :  { %v1296_v14 = vpop.xlane.xlu0 %1295 }
 0x3f7   :  { %v1297_v15 = vsub.f32 %v1294_v13, %v1296_v14 }
 0x3f9   :  { %v1298_v16 = vmul.f32 1.442695, %v1297_v15 }
 0x3fb   :  { %1726 = vpow2.f32 %v1298_v16 }
 0x405   :  { %v1727_v17 = vpop.eup %1726 }
 0x406   :  { %1300 = vadd.xlane.f32.xlu0 %v1727_v17 }
 0x493   :  { %v1301_v18 = vpop.xlane.xlu0 %1300 }
 0x494   :  { %1728 = vlog2.f32 %v1301_v18 }
 0x49e   :  { %v1729_v19 = vpop.eup %1728 }
 0x49f   :  { %v1303_v20 = vmul.f32 0.6931472, %v1729_v19 }
 0x4a1   :  { %v1304_v21 = vsub.f32 %v1297_v15, %v1303_v20 }
 0x4a3   :  { %1305 = vst [vmem:[#allocation10] sm:$0xff] %v1304_v21 }
 0x4a4   :  { %1829 = shalt.err (!%p1826_p8)
}
 0x4a5   :  { %s1830_s10 = scalar_lea.hbm %s1982_s7, 128 }
 0x4a6   :  { %p1831_p9 = scmp.ne.s32.totalorder %s1982_s7, %s1830_s10  ;;  %p1834_p10 = scmp.lt.u32.totalorder %s1830_s10, %s1982_s7 }
 0x4a8   :  { %p1836_p11 = pnand %p1834_p10, %p1831_p9 }
 0x4aa   :  { %1839 = shalt.err (!%p1836_p11)
}
 0x4ab   :  { %1315 = dma.vmem_to_hbm [thread:$0]  %s1313_s30, 128, %s1982_s7, [#allocation4]  }
 0x4ac   :  { %1846 = dma.done.wait [#allocation4], 128  }
 0x4ad   :  { %1847 = vsyncadd [#allocation4], 4294967168 }
 0x4ae   :  { %1319 = vsyncpa [#allocation3], 1 }
 0x4af   :  { %1320 = vsyncpa [#allocation6], 1 }
 0x4b0   :  { %1321 = vsyncpa [#allocation9], 1 }
 0x4b1   :  { %1322 = vsyncpa [#allocation4], 1 }

</bundles_post_ra>
